<compile_context>
chip_gen: v7x
topology: tpu7x:2x2x1
jax: 0.10.0
libtpu: 0.0.40
codegen_flags: <defaults>
</compile_context>

<pallas_src>
import functools

import jax
import jax.numpy as jnp
from jax import lax
from jax.experimental import pallas as pl
from jax.experimental.pallas import tpu as pltpu


# ------------------------- Pallas kernel -------------------------

def _dsconv_kernel(x_ref, wdw_ref, bdw_ref, wpw_ref, scale_ref, shift_ref,
                   o_ref, dw_ref, *, H, W, use_mxu):
    """Fused depthwise-3x3 + pointwise-1x1 + BN(eval) + ReLU.

    Grid = (batch_tiles, cout_tiles); axis 0 is "parallel", axis 1 is "arbitrary".

    x_ref     : (Bt*Cin, HW)  f32      Bt images x Cin channels in sublanes, spatial in lanes
    wdw_ref   : (Bt*Cin, 9)   f32      depthwise taps (tiled over Bt), tap index = ky*3+kx
    bdw_ref   : (Bt*Cin, 1)   f32      depthwise bias (tiled over Bt)
    wpw_ref   : (Ct, Cin)     f32/bf16 pointwise 1x1 weight tile
    scale_ref : (Ct, 1)       f32      folded BN scale
    shift_ref : (Ct, 1)       f32      folded BN shift (includes pointwise bias)
    o_ref     : (Bt, Ct, HW)  bf16     output tile (lane-dense store)
    dw_ref    : (Bt*Cin, HW)  f32      VMEM scratch: depthwise result, reused across Ct tiles
    """
    rows, hw = x_ref.shape
    bt, ct, _ = o_ref.shape
    cin = rows // bt

    # ----- depthwise 3x3: computed once per batch block, cached in VMEM scratch -----
    @pl.when(pl.program_id(1) == 0)
    def _():
        x = x_ref[...]                                    # (Bt*Cin, HW) f32
        wdw = wdw_ref[...]                                # (Bt*Cin, 9)

        # In-kernel boundary masks from a 2-D iota (no HBM mask traffic).
        pos = lax.broadcasted_iota(jnp.int32, (1, hw), 1)
        if (W & (W - 1)) == 0:                            # power-of-two width: shift/and
            col = pos & (W - 1)
        else:
            # f32 floor-div fallback; exact while H*W is below ~2**21 pixels.
            r = jnp.floor((pos.astype(jnp.float32) + 0.5) * (1.0 / W)).astype(jnp.int32)
            col = pos - r * W
        row_m = {-1: (pos >= W).astype(jnp.float32),
                 1: (pos < (H - 1) * W).astype(jnp.float32)}
        col_m = {-1: (col >= 1).astype(jnp.float32),
                 1: (col <= W - 2).astype(jnp.float32)}

        acc = x * wdw[:, 4:5]                             # center tap (always valid)
        for ky in range(3):
            for kx in range(3):
                dy, dx = ky - 1, kx - 1
                if dy == 0 and dx == 0:
                    continue
                s = dy * W + dx                            # flat lane offset of this tap
                shifted = pltpu.roll(x, (-s) % hw, axis=1)
                if dy == 0:
                    mask = col_m[dx]
                elif dx == 0:
                    mask = row_m[dy]
                else:
                    mask = row_m[dy] * col_m[dx]
                # mask zeroes both out-of-image taps and the roll's wrapped lanes.
                acc = acc + (shifted * mask) * wdw[:, ky * 3 + kx:ky * 3 + kx + 1]
        dw_ref[...] = acc + bdw_ref[...]

    # ----- pointwise 1x1 + folded BatchNorm + ReLU, per Cout tile -----
    dw = dw_ref[...]                                       # (Bt*Cin, HW) f32
    w = wpw_ref[...]                                       # (Ct, Cin)
    scale = scale_ref[...]                                 # (Ct, 1)
    shift = shift_ref[...]                                 # (Ct, 1)
    for b in range(bt):
        d_b = dw[b * cin:(b + 1) * cin, :]                 # (Cin, HW)
        if use_mxu:
            acc = jnp.dot(w, d_b.astype(w.dtype), preferred_element_type=jnp.float32)
        else:
            # tiny channel counts: VPU broadcast-FMAs in f32 (skips MXU + bf16 cast)
            acc = jnp.zeros((ct, hw), jnp.float32)
            for ci in range(cin):
                acc = acc + w[:, ci:ci + 1] * d_b[ci:ci + 1, :]
        o_ref[b] = jnp.maximum(acc * scale + shift, 0.0).astype(o_ref.dtype)


# ------------------------- wrapper -------------------------

def _divisors(n):
    return [d for d in range(1, n + 1) if n % d == 0]


def depthwise_separable_conv_forward(x_nchw, params, eps=1e-5,
                                     out_dtype=jnp.bfloat16,
                                     vmem_budget_bytes=8 * 1024 * 1024):
    """Forward pass matching the PyTorch module (eval-mode BN). Input NCHW f32."""
    N, Cin, H, W = x_nchw.shape
    HW = H * W
    Cout = params["w_pw"].shape[0]
    out_itemsize = jnp.dtype(out_dtype).itemsize

    # ----- tile selection -----
    # Cout tile: full Cout when small, else the largest divisor that is a multiple of 8
    # and <= 256 (MXU / sublane friendly).
    ct_cands = [d for d in _divisors(Cout) if (d % 8 == 0 or d == Cout)]
    Ct = max([d for d in ct_cands if d <= 256] or [Cout])

    # Batch tile: as many images per grid step as fit the per-step VMEM budget, keeping
    # Bt*Cin sublane-aligned (multiple of 8, or the full batch) so the BlockSpec is legal.
    per_image = HW * (2 * 4 * Cin              # x block, f32, double-buffered
                      + 4 * Cin                # dw scratch, f32
                      + 2 * out_itemsize * Ct)  # out block, double-buffered
    bt_cap = max(1, vmem_budget_bytes // max(per_image, 1))
    bt_cands = [d for d in _divisors(N) if ((d * Cin) % 8 == 0 or d == N)]
    under = [d for d in bt_cands if d <= bt_cap]
    Bt = max(under) if under else min(bt_cands)

    use_mxu = Cin >= 64      # tiny-K matmuls waste the systolic array; use the VPU instead

    # ----- operand preparation (views / tiny arrays only; no wrapper transposes) -----
    x2 = x_nchw.reshape(N * Cin, HW)                                 # pure view
    w_dw = jnp.tile(params["w_dw"].reshape(Cin, 9), (Bt, 1))          # (Bt*Cin, 9)
    b_dw = jnp.tile(params["b_dw"].reshape(Cin, 1), (Bt, 1))          # (Bt*Cin, 1)
    w_pw = params["w_pw"][:, :, 0, 0]
    w_pw = w_pw.astype(jnp.bfloat16) if use_mxu else w_pw.astype(jnp.float32)

    # Fold BN running stats + pointwise bias into per-channel scale/shift (f32).
    scale = params["bn_g"] / jnp.sqrt(params["bn_v"] + eps)
    shift = (params["b_pw"] - params["bn_m"]) * scale + params["bn_b"]
    scale = scale.reshape(Cout, 1).astype(jnp.float32)
    shift = shift.reshape(Cout, 1).astype(jnp.float32)

    grid = (N // Bt, Cout // Ct)

    # ----- VMEM / cost bookkeeping -----
    need_bytes = (2 * Bt * Cin * HW * 4                 # x (double-buffered)
                  + Bt * Cin * HW * 4                   # dw scratch
                  + 2 * Bt * Ct * HW * out_itemsize     # out (double-buffered)
                  + 4 * Bt * Cin * 10 + 8 * Ct + w_pw.dtype.itemsize * Ct * Cin)
    vmem_limit = int(min(64 * 2 ** 20, max(2 * need_bytes, 16 * 2 ** 20)))

    flops = N * (2 * 9 * Cin * HW + 2 * Cout * Cin * HW + 3 * Cout * HW)
    bytes_accessed = (4 * N * Cin * HW + out_itemsize * N * Cout * HW
                      + 4 * Bt * Cin * 10 + w_pw.dtype.itemsize * Cout * Cin + 8 * Cout)

    out = pl.pallas_call(
        functools.partial(_dsconv_kernel, H=H, W=W, use_mxu=use_mxu),
        out_shape=jax.ShapeDtypeStruct((N, Cout, HW), out_dtype),
        grid=grid,
        in_specs=[
            pl.BlockSpec((Bt * Cin, HW), lambda i, j: (i, 0)),   # x (constant over j)
            pl.BlockSpec((Bt * Cin, 9), lambda i, j: (0, 0)),    # depthwise weight
            pl.BlockSpec((Bt * Cin, 1), lambda i, j: (0, 0)),    # depthwise bias
            pl.BlockSpec((Ct, Cin), lambda i, j: (j, 0)),        # pointwise weight tile
            pl.BlockSpec((Ct, 1), lambda i, j: (j, 0)),          # folded BN scale
            pl.BlockSpec((Ct, 1), lambda i, j: (j, 0)),          # folded BN shift
        ],
        out_specs=pl.BlockSpec((Bt, Ct, HW), lambda i, j: (i, j, 0)),
        scratch_shapes=[pltpu.VMEM((Bt * Cin, HW), jnp.float32)],
        compiler_params=pltpu.CompilerParams(
            dimension_semantics=("parallel", "arbitrary"),
            vmem_limit_bytes=vmem_limit),
        cost_estimate=pl.CostEstimate(flops=flops, transcendentals=0,
                                      bytes_accessed=bytes_accessed),
    )(x2, w_dw, b_dw, w_pw, scale, shift)

    return out.reshape(N, Cout, H, W)                    # already NCHW


# ------------------------- pure-JAX reference -------------------------

def _ref_forward(x, p, eps=1e-5):
    in_c = p["w_dw"].shape[0]
    y = lax.conv_general_dilated(x, p["w_dw"], window_strides=(1, 1),
                                 padding=[(1, 1), (1, 1)],
                                 dimension_numbers=("NCHW", "OIHW", "NCHW"),
                                 feature_group_count=in_c)
    y = y + p["b_dw"][None, :, None, None]
    y = lax.conv_general_dilated(y, p["w_pw"], window_strides=(1, 1),
                                 padding=[(0, 0), (0, 0)],
                                 dimension_numbers=("NCHW", "OIHW", "NCHW"))
    y = y + p["b_pw"][None, :, None, None]
    y = (y - p["bn_m"][None, :, None, None]) / jnp.sqrt(p["bn_v"][None, :, None, None] + eps)
    y = y * p["bn_g"][None, :, None, None] + p["bn_b"][None, :, None, None]
    return jnp.maximum(y, 0.0)


# ------------------------- main -------------------------

if __name__ == "__main__":
    key = jax.random.PRNGKey(0)
    in_c, out_c, N, H, W = 4, 8, 2, 16, 16
    ks = jax.random.split(key, 9)

    params = {
        "w_dw": jax.random.normal(ks[0], (in_c, 1, 3, 3), jnp.float32) * 0.2,
        "b_dw": jax.random.normal(ks[1], (in_c,), jnp.float32) * 0.1,
        "w_pw": jax.random.normal(ks[2], (out_c, in_c, 1, 1), jnp.float32) * 0.3,
        "b_pw": jax.random.normal(ks[3], (out_c,), jnp.float32) * 0.1,
        "bn_g": 1.0 + 0.1 * jax.random.normal(ks[4], (out_c,), jnp.float32),
        "bn_b": 0.1 * jax.random.normal(ks[5], (out_c,), jnp.float32),
        "bn_m": 0.1 * jax.random.normal(ks[6], (out_c,), jnp.float32),
        "bn_v": 0.5 + jnp.abs(jax.random.normal(ks[7], (out_c,), jnp.float32)),
    }

    x = jax.random.normal(ks[8], (N, in_c, H, W), jnp.float32)   # NCHW, like PyTorch

    out = jax.block_until_ready(depthwise_separable_conv_forward(x, params))
    ref = jax.block_until_ready(_ref_forward(x, params))

    assert out.shape == (N, out_c, H, W), out.shape
    assert out.dtype == jnp.bfloat16, out.dtype
    out_f32 = out.astype(jnp.float32)
    max_err = float(jnp.max(jnp.abs(out_f32 - ref)))
    # bf16 output store -> relaxed tolerance vs the f32 reference.
    assert jnp.allclose(out_f32, ref, rtol=2e-2, atol=2e-2), max_err
    print("KERNEL_OK")
</pallas_src>

<mosaic_0001>
module attributes {stable_mosaic.version = 11 : i64} {
  func.func @_dsconv_kernel(%arg0: i32, %arg1: i32, %arg2: memref<8x256xf32, #tpu.memory_space<vmem>>, %arg3: memref<8x9xf32, #tpu.memory_space<vmem>>, %arg4: memref<8x1xf32, #tpu.memory_space<vmem>>, %arg5: memref<8x4xf32, #tpu.memory_space<vmem>>, %arg6: memref<8x1xf32, #tpu.memory_space<vmem>>, %arg7: memref<8x1xf32, #tpu.memory_space<vmem>>, %arg8: memref<2x8x256xbf16, #tpu.memory_space<vmem>>, %arg9: memref<8x256xf32, #tpu.memory_space<vmem>>) attributes {dimension_semantics = [#tpu.dimension_semantics<parallel>, #tpu.dimension_semantics<arbitrary>], iteration_bounds = array<i64: 1, 1>, scalar_prefetch = 0 : i64, scratch_operands = 1 : i64, tpu.core_type = #tpu.core_type<tc>, window_params = [{transform_indices = @transform_0, window_bounds = array<i64: 8, 256>}, {pipeline_mode = #tpu.pipeline_mode<synchronous>, transform_indices = @transform_1, window_bounds = array<i64: 8, 9>}, {pipeline_mode = #tpu.pipeline_mode<synchronous>, transform_indices = @transform_2, window_bounds = array<i64: 8, 1>}, {transform_indices = @transform_3, window_bounds = array<i64: 8, 4>}, {transform_indices = @transform_4, window_bounds = array<i64: 8, 1>}, {transform_indices = @transform_5, window_bounds = array<i64: 8, 1>}, {transform_indices = @transform_6, window_bounds = array<i64: 2, 8, 256>}]} {
    %c0_i32 = arith.constant 0 : i32
    %0 = arith.cmpi eq, %arg1, %c0_i32 : i32
    %1 = arith.extui %0 : i1 to i32
    %c0_i32_0 = arith.constant 0 : i32
    %2 = arith.cmpi ne, %1, %c0_i32_0 : i32
    scf.if %2 {
      %c0_16 = arith.constant 0 : index
      %c0_17 = arith.constant 0 : index
      %79 = vector.load %arg2[%c0_16, %c0_17] : memref<8x256xf32, #tpu.memory_space<vmem>>, vector<8x256xf32>
      %c0_18 = arith.constant 0 : index
      %c0_19 = arith.constant 0 : index
      %80 = vector.load %arg3[%c0_18, %c0_19] : memref<8x9xf32, #tpu.memory_space<vmem>>, vector<8x9xf32>
      %81 = tpu.iota {dimensions = array<i32: 1>} : vector<1x256xi32>
      %c15_i32 = arith.constant 15 : i32
      %82 = vector.broadcast %c15_i32 : i32 to vector<1x256xi32>
      %83 = arith.andi %81, %82 : vector<1x256xi32>
      %c16_i32 = arith.constant 16 : i32
      %84 = vector.broadcast %c16_i32 : i32 to vector<1x256xi32>
      %85 = arith.cmpi sge, %81, %84 : vector<1x256xi32>
      %86 = arith.extui %85 : vector<1x256xi1> to vector<1x256xi32>
      %87 = arith.sitofp %86 : vector<1x256xi32> to vector<1x256xf32>
      %c240_i32 = arith.constant 240 : i32
      %88 = vector.broadcast %c240_i32 : i32 to vector<1x256xi32>
      %89 = arith.cmpi slt, %81, %88 : vector<1x256xi32>
      %90 = arith.extui %89 : vector<1x256xi1> to vector<1x256xi32>
      %91 = arith.sitofp %90 : vector<1x256xi32> to vector<1x256xf32>
      %c1_i32 = arith.constant 1 : i32
      %92 = vector.broadcast %c1_i32 : i32 to vector<1x256xi32>
      %93 = arith.cmpi sge, %83, %92 : vector<1x256xi32>
      %94 = arith.extui %93 : vector<1x256xi1> to vector<1x256xi32>
      %95 = arith.sitofp %94 : vector<1x256xi32> to vector<1x256xf32>
      %c14_i32 = arith.constant 14 : i32
      %96 = vector.broadcast %c14_i32 : i32 to vector<1x256xi32>
      %97 = arith.cmpi sle, %83, %96 : vector<1x256xi32>
      %98 = arith.extui %97 : vector<1x256xi1> to vector<1x256xi32>
      %99 = arith.sitofp %98 : vector<1x256xi32> to vector<1x256xf32>
      %100 = vector.extract_strided_slice %80 {offsets = [0, 4], sizes = [8, 1], strides = [1, 1]} : vector<8x9xf32> to vector<8x1xf32>
      %101 = vector.broadcast %100 : vector<8x1xf32> to vector<8x256xf32>
      %102 = arith.mulf %79, %101 : vector<8x256xf32>
      %c17_i32 = arith.constant 17 : i32
      %103 = tpu.dynamic_rotate %79 by %c17_i32 dim 1 : vector<8x256xf32>, i32 -> vector<8x256xf32>
      %104 = arith.mulf %87, %95 : vector<1x256xf32>
      %105 = vector.broadcast %104 : vector<1x256xf32> to vector<8x256xf32>
      %106 = arith.mulf %103, %105 : vector<8x256xf32>
      %107 = vector.extract_strided_slice %80 {offsets = [0, 0], sizes = [8, 1], strides = [1, 1]} : vector<8x9xf32> to vector<8x1xf32>
      %108 = vector.broadcast %107 : vector<8x1xf32> to vector<8x256xf32>
      %109 = arith.mulf %106, %108 : vector<8x256xf32>
      %110 = arith.addf %102, %109 : vector<8x256xf32>
      %c16_i32_20 = arith.constant 16 : i32
      %111 = tpu.dynamic_rotate %79 by %c16_i32_20 dim 1 : vector<8x256xf32>, i32 -> vector<8x256xf32>
      %112 = vector.broadcast %87 : vector<1x256xf32> to vector<8x256xf32>
      %113 = arith.mulf %111, %112 : vector<8x256xf32>
      %114 = vector.extract_strided_slice %80 {offsets = [0, 1], sizes = [8, 1], strides = [1, 1]} : vector<8x9xf32> to vector<8x1xf32>
      %115 = vector.broadcast %114 : vector<8x1xf32> to vector<8x256xf32>
      %116 = arith.mulf %113, %115 : vector<8x256xf32>
      %117 = arith.addf %110, %116 : vector<8x256xf32>
      %c15_i32_21 = arith.constant 15 : i32
      %118 = tpu.dynamic_rotate %79 by %c15_i32_21 dim 1 : vector<8x256xf32>, i32 -> vector<8x256xf32>
      %119 = arith.mulf %87, %99 : vector<1x256xf32>
      %120 = vector.broadcast %119 : vector<1x256xf32> to vector<8x256xf32>
      %121 = arith.mulf %118, %120 : vector<8x256xf32>
      %122 = vector.extract_strided_slice %80 {offsets = [0, 2], sizes = [8, 1], strides = [1, 1]} : vector<8x9xf32> to vector<8x1xf32>
      %123 = vector.broadcast %122 : vector<8x1xf32> to vector<8x256xf32>
      %124 = arith.mulf %121, %123 : vector<8x256xf32>
      %125 = arith.addf %117, %124 : vector<8x256xf32>
      %c1_i32_22 = arith.constant 1 : i32
      %126 = tpu.dynamic_rotate %79 by %c1_i32_22 dim 1 : vector<8x256xf32>, i32 -> vector<8x256xf32>
      %127 = vector.broadcast %95 : vector<1x256xf32> to vector<8x256xf32>
      %128 = arith.mulf %126, %127 : vector<8x256xf32>
      %129 = vector.extract_strided_slice %80 {offsets = [0, 3], sizes = [8, 1], strides = [1, 1]} : vector<8x9xf32> to vector<8x1xf32>
      %130 = vector.broadcast %129 : vector<8x1xf32> to vector<8x256xf32>
      %131 = arith.mulf %128, %130 : vector<8x256xf32>
      %132 = arith.addf %125, %131 : vector<8x256xf32>
      %c255_i32 = arith.constant 255 : i32
      %133 = tpu.dynamic_rotate %79 by %c255_i32 dim 1 : vector<8x256xf32>, i32 -> vector<8x256xf32>
      %134 = vector.broadcast %99 : vector<1x256xf32> to vector<8x256xf32>
      %135 = arith.mulf %133, %134 : vector<8x256xf32>
      %136 = vector.extract_strided_slice %80 {offsets = [0, 5], sizes = [8, 1], strides = [1, 1]} : vector<8x9xf32> to vector<8x1xf32>
      %137 = vector.broadcast %136 : vector<8x1xf32> to vector<8x256xf32>
      %138 = arith.mulf %135, %137 : vector<8x256xf32>
      %139 = arith.addf %132, %138 : vector<8x256xf32>
      %c241_i32 = arith.constant 241 : i32
      %140 = tpu.dynamic_rotate %79 by %c241_i32 dim 1 : vector<8x256xf32>, i32 -> vector<8x256xf32>
      %141 = arith.mulf %91, %95 : vector<1x256xf32>
      %142 = vector.broadcast %141 : vector<1x256xf32> to vector<8x256xf32>
      %143 = arith.mulf %140, %142 : vector<8x256xf32>
      %144 = vector.extract_strided_slice %80 {offsets = [0, 6], sizes = [8, 1], strides = [1, 1]} : vector<8x9xf32> to vector<8x1xf32>
      %145 = vector.broadcast %144 : vector<8x1xf32> to vector<8x256xf32>
      %146 = arith.mulf %143, %145 : vector<8x256xf32>
      %147 = arith.addf %139, %146 : vector<8x256xf32>
      %c240_i32_23 = arith.constant 240 : i32
      %148 = tpu.dynamic_rotate %79 by %c240_i32_23 dim 1 : vector<8x256xf32>, i32 -> vector<8x256xf32>
      %149 = vector.broadcast %91 : vector<1x256xf32> to vector<8x256xf32>
      %150 = arith.mulf %148, %149 : vector<8x256xf32>
      %151 = vector.extract_strided_slice %80 {offsets = [0, 7], sizes = [8, 1], strides = [1, 1]} : vector<8x9xf32> to vector<8x1xf32>
      %152 = vector.broadcast %151 : vector<8x1xf32> to vector<8x256xf32>
      %153 = arith.mulf %150, %152 : vector<8x256xf32>
      %154 = arith.addf %147, %153 : vector<8x256xf32>
      %c239_i32 = arith.constant 239 : i32
      %155 = tpu.dynamic_rotate %79 by %c239_i32 dim 1 : vector<8x256xf32>, i32 -> vector<8x256xf32>
      %156 = arith.mulf %91, %99 : vector<1x256xf32>
      %157 = vector.broadcast %156 : vector<1x256xf32> to vector<8x256xf32>
      %158 = arith.mulf %155, %157 : vector<8x256xf32>
      %159 = vector.extract_strided_slice %80 {offsets = [0, 8], sizes = [8, 1], strides = [1, 1]} : vector<8x9xf32> to vector<8x1xf32>
      %160 = vector.broadcast %159 : vector<8x1xf32> to vector<8x256xf32>
      %161 = arith.mulf %158, %160 : vector<8x256xf32>
      %162 = arith.addf %154, %161 : vector<8x256xf32>
      %c0_24 = arith.constant 0 : index
      %c0_25 = arith.constant 0 : index
      %163 = vector.load %arg4[%c0_24, %c0_25] : memref<8x1xf32, #tpu.memory_space<vmem>>, vector<8x1xf32>
      %164 = vector.broadcast %163 : vector<8x1xf32> to vector<8x256xf32>
      %165 = arith.addf %162, %164 : vector<8x256xf32>
      %c0_26 = arith.constant 0 : index
      %c0_27 = arith.constant 0 : index
      %166 = vector.load %arg9[%c0_26, %c0_27] : memref<8x256xf32, #tpu.memory_space<vmem>>, vector<8x256xf32>
      tpu.vector_store %arg9[%c0_26, %c0_27], %165 {strides = array<i32>} : memref<8x256xf32, #tpu.memory_space<vmem>>, vector<8x256xf32>,
    } else {
    }
    %c0 = arith.constant 0 : index
    %c0_1 = arith.constant 0 : index
    %3 = vector.load %arg9[%c0, %c0_1] : memref<8x256xf32, #tpu.memory_space<vmem>>, vector<8x256xf32>
    %c0_2 = arith.constant 0 : index
    %c0_3 = arith.constant 0 : index
    %4 = vector.load %arg5[%c0_2, %c0_3] : memref<8x4xf32, #tpu.memory_space<vmem>>, vector<8x4xf32>
    %c0_4 = arith.constant 0 : index
    %c0_5 = arith.constant 0 : index
    %5 = vector.load %arg6[%c0_4, %c0_5] : memref<8x1xf32, #tpu.memory_space<vmem>>, vector<8x1xf32>
    %c0_6 = arith.constant 0 : index
    %c0_7 = arith.constant 0 : index
    %6 = vector.load %arg7[%c0_6, %c0_7] : memref<8x1xf32, #tpu.memory_space<vmem>>, vector<8x1xf32>
    %7 = vector.extract_strided_slice %3 {offsets = [0, 0], sizes = [4, 256], strides = [1, 1]} : vector<8x256xf32> to vector<4x256xf32>
    %cst = arith.constant 0.000000e+00 : f32
    %8 = vector.broadcast %cst : f32 to vector<8x256xf32>
    %9 = vector.extract_strided_slice %4 {offsets = [0, 0], sizes = [8, 1], strides = [1, 1]} : vector<8x4xf32> to vector<8x1xf32>
    %10 = vector.extract_strided_slice %7 {offsets = [0, 0], sizes = [1, 256], strides = [1, 1]} : vector<4x256xf32> to vector<1x256xf32>
    %11 = vector.broadcast %9 : vector<8x1xf32> to vector<8x256xf32>
    %12 = vector.broadcast %10 : vector<1x256xf32> to vector<8x256xf32>
    %13 = arith.mulf %11, %12 : vector<8x256xf32>
    %14 = arith.addf %8, %13 : vector<8x256xf32>
    %15 = vector.extract_strided_slice %4 {offsets = [0, 1], sizes = [8, 1], strides = [1, 1]} : vector<8x4xf32> to vector<8x1xf32>
    %16 = vector.extract_strided_slice %7 {offsets = [1, 0], sizes = [1, 256], strides = [1, 1]} : vector<4x256xf32> to vector<1x256xf32>
    %17 = vector.broadcast %15 : vector<8x1xf32> to vector<8x256xf32>
    %18 = vector.broadcast %16 : vector<1x256xf32> to vector<8x256xf32>
    %19 = arith.mulf %17, %18 : vector<8x256xf32>
    %20 = arith.addf %14, %19 : vector<8x256xf32>
    %21 = vector.extract_strided_slice %4 {offsets = [0, 2], sizes = [8, 1], strides = [1, 1]} : vector<8x4xf32> to vector<8x1xf32>
    %22 = vector.extract_strided_slice %7 {offsets = [2, 0], sizes = [1, 256], strides = [1, 1]} : vector<4x256xf32> to vector<1x256xf32>
    %23 = vector.broadcast %21 : vector<8x1xf32> to vector<8x256xf32>
    %24 = vector.broadcast %22 : vector<1x256xf32> to vector<8x256xf32>
    %25 = arith.mulf %23, %24 : vector<8x256xf32>
    %26 = arith.addf %20, %25 : vector<8x256xf32>
    %27 = vector.extract_strided_slice %4 {offsets = [0, 3], sizes = [8, 1], strides = [1, 1]} : vector<8x4xf32> to vector<8x1xf32>
    %28 = vector.extract_strided_slice %7 {offsets = [3, 0], sizes = [1, 256], strides = [1, 1]} : vector<4x256xf32> to vector<1x256xf32>
    %29 = vector.broadcast %27 : vector<8x1xf32> to vector<8x256xf32>
    %30 = vector.broadcast %28 : vector<1x256xf32> to vector<8x256xf32>
    %31 = arith.mulf %29, %30 : vector<8x256xf32>
    %32 = arith.addf %26, %31 : vector<8x256xf32>
    %33 = vector.broadcast %5 : vector<8x1xf32> to vector<8x256xf32>
    %34 = arith.mulf %32, %33 : vector<8x256xf32>
    %35 = vector.broadcast %6 : vector<8x1xf32> to vector<8x256xf32>
    %36 = arith.addf %34, %35 : vector<8x256xf32>
    %cst_8 = arith.constant 0.000000e+00 : f32
    %37 = vector.broadcast %cst_8 : f32 to vector<8x256xf32>
    %38 = arith.maximumf %36, %37 : vector<8x256xf32>
    %39 = arith.truncf %38 : vector<8x256xf32> to vector<8x256xbf16>
    %c0_9 = arith.constant 0 : index
    %c0_10 = arith.constant 0 : index
    %c0_11 = arith.constant 0 : index
    %40 = vector.load %arg8[%c0_9, %c0_10, %c0_11] : memref<2x8x256xbf16, #tpu.memory_space<vmem>>, vector<1x8x256xbf16>
    %41 = vector.shape_cast %40 : vector<1x8x256xbf16> to vector<8x256xbf16>
    %42 = vector.shape_cast %39 : vector<8x256xbf16> to vector<1x8x256xbf16>
    tpu.vector_store %arg8[%c0_9, %c0_10, %c0_11], %42 {strides = array<i32>} : memref<2x8x256xbf16, #tpu.memory_space<vmem>>, vector<1x8x256xbf16>,
    %43 = vector.extract_strided_slice %3 {offsets = [4, 0], sizes = [4, 256], strides = [1, 1]} : vector<8x256xf32> to vector<4x256xf32>
    %cst_12 = arith.constant 0.000000e+00 : f32
    %44 = vector.broadcast %cst_12 : f32 to vector<8x256xf32>
    %45 = vector.extract_strided_slice %4 {offsets = [0, 0], sizes = [8, 1], strides = [1, 1]} : vector<8x4xf32> to vector<8x1xf32>
    %46 = vector.extract_strided_slice %43 {offsets = [0, 0], sizes = [1, 256], strides = [1, 1]} : vector<4x256xf32> to vector<1x256xf32>
    %47 = vector.broadcast %45 : vector<8x1xf32> to vector<8x256xf32>
    %48 = vector.broadcast %46 : vector<1x256xf32> to vector<8x256xf32>
    %49 = arith.mulf %47, %48 : vector<8x256xf32>
    %50 = arith.addf %44, %49 : vector<8x256xf32>
    %51 = vector.extract_strided_slice %4 {offsets = [0, 1], sizes = [8, 1], strides = [1, 1]} : vector<8x4xf32> to vector<8x1xf32>
    %52 = vector.extract_strided_slice %43 {offsets = [1, 0], sizes = [1, 256], strides = [1, 1]} : vector<4x256xf32> to vector<1x256xf32>
    %53 = vector.broadcast %51 : vector<8x1xf32> to vector<8x256xf32>
    %54 = vector.broadcast %52 : vector<1x256xf32> to vector<8x256xf32>
    %55 = arith.mulf %53, %54 : vector<8x256xf32>
    %56 = arith.addf %50, %55 : vector<8x256xf32>
    %57 = vector.extract_strided_slice %4 {offsets = [0, 2], sizes = [8, 1], strides = [1, 1]} : vector<8x4xf32> to vector<8x1xf32>
    %58 = vector.extract_strided_slice %43 {offsets = [2, 0], sizes = [1, 256], strides = [1, 1]} : vector<4x256xf32> to vector<1x256xf32>
    %59 = vector.broadcast %57 : vector<8x1xf32> to vector<8x256xf32>
    %60 = vector.broadcast %58 : vector<1x256xf32> to vector<8x256xf32>
    %61 = arith.mulf %59, %60 : vector<8x256xf32>
    %62 = arith.addf %56, %61 : vector<8x256xf32>
    %63 = vector.extract_strided_slice %4 {offsets = [0, 3], sizes = [8, 1], strides = [1, 1]} : vector<8x4xf32> to vector<8x1xf32>
    %64 = vector.extract_strided_slice %43 {offsets = [3, 0], sizes = [1, 256], strides = [1, 1]} : vector<4x256xf32> to vector<1x256xf32>
    %65 = vector.broadcast %63 : vector<8x1xf32> to vector<8x256xf32>
    %66 = vector.broadcast %64 : vector<1x256xf32> to vector<8x256xf32>
    %67 = arith.mulf %65, %66 : vector<8x256xf32>
    %68 = arith.addf %62, %67 : vector<8x256xf32>
    %69 = vector.broadcast %5 : vector<8x1xf32> to vector<8x256xf32>
    %70 = arith.mulf %68, %69 : vector<8x256xf32>
    %71 = vector.broadcast %6 : vector<8x1xf32> to vector<8x256xf32>
    %72 = arith.addf %70, %71 : vector<8x256xf32>
    %cst_13 = arith.constant 0.000000e+00 : f32
    %73 = vector.broadcast %cst_13 : f32 to vector<8x256xf32>
    %74 = arith.maximumf %72, %73 : vector<8x256xf32>
    %75 = arith.truncf %74 : vector<8x256xf32> to vector<8x256xbf16>
    %c1 = arith.constant 1 : index
    %c0_14 = arith.constant 0 : index
    %c0_15 = arith.constant 0 : index
    %76 = vector.load %arg8[%c1, %c0_14, %c0_15] : memref<2x8x256xbf16, #tpu.memory_space<vmem>>, vector<1x8x256xbf16>
    %77 = vector.shape_cast %76 : vector<1x8x256xbf16> to vector<8x256xbf16>
    %78 = vector.shape_cast %75 : vector<8x256xbf16> to vector<1x8x256xbf16>
    tpu.vector_store %arg8[%c1, %c0_14, %c0_15], %78 {strides = array<i32>} : memref<2x8x256xbf16, #tpu.memory_space<vmem>>, vector<1x8x256xbf16>,
    return
  }
  func.func @transform_0(%arg0: i32, %arg1: i32) -> (i32, i32) {
    %c0_i32 = arith.constant 0 : i32
    %c0_i32_0 = arith.constant 0 : i32
    return %arg0, %c0_i32 : i32, i32
  }
  func.func @transform_1(%arg0: i32, %arg1: i32) -> (i32, i32) {
    %c0_i32 = arith.constant 0 : i32
    %c0_i32_0 = arith.constant 0 : i32
    %c0_i32_1 = arith.constant 0 : i32
    return %c0_i32, %c0_i32_0 : i32, i32
  }
  func.func @transform_2(%arg0: i32, %arg1: i32) -> (i32, i32) {
    %c0_i32 = arith.constant 0 : i32
    %c0_i32_0 = arith.constant 0 : i32
    %c0_i32_1 = arith.constant 0 : i32
    return %c0_i32, %c0_i32_0 : i32, i32
  }
  func.func @transform_3(%arg0: i32, %arg1: i32) -> (i32, i32) {
    %c0_i32 = arith.constant 0 : i32
    %c0_i32_0 = arith.constant 0 : i32
    return %arg1, %c0_i32 : i32, i32
  }
  func.func @transform_4(%arg0: i32, %arg1: i32) -> (i32, i32) {
    %c0_i32 = arith.constant 0 : i32
    %c0_i32_0 = arith.constant 0 : i32
    return %arg1, %c0_i32 : i32, i32
  }
  func.func @transform_5(%arg0: i32, %arg1: i32) -> (i32, i32) {
    %c0_i32 = arith.constant 0 : i32
    %c0_i32_0 = arith.constant 0 : i32
    return %arg1, %c0_i32 : i32, i32
  }
  func.func @transform_6(%arg0: i32, %arg1: i32) -> (i32, i32, i32) {
    %c0_i32 = arith.constant 0 : i32
    %c0_i32_0 = arith.constant 0 : i32
    return %arg0, %arg1, %c0_i32 : i32, i32, i32
  }
}

</mosaic_0001>

<bundles_post_ra>
// kernel: tpu_custom_call.1
= control target key start
LH: loop header
LB: loop body
LE: loop exit
PB: predicated region body
PF: predicated region fallthrough
CT: control target
= control target key end

     0   :  { %v467_v1 = vmov 1   ;;  %v468_v2 = vmov 4   ;;  %s629_s0 = inlined_call_operand.vmem [shape: f32[8,256], index: 0, kind: input, shape index: {}]   ;;  %s630_s1 = inlined_call_operand.vmem [shape: f32[8,9], index: 1, kind: input, shape index: {}]   ;;  %s631_s2 = inlined_call_operand.vmem [shape: f32[8,1], index: 2, kind: input, shape index: {}]   ;;  %s632_s3 = inlined_call_operand.vmem [shape: f32[8,4], index: 3, kind: input, shape index: {}]   ;;  %s633_s4 = inlined_call_operand.vmem [shape: f32[8,1], index: 4, kind: input, shape index: {}]   ;;  %s634_s5 = inlined_call_operand.vmem [shape: f32[8,1], index: 5, kind: input, shape index: {}]   ;;  %s635_s6 = inlined_call_operand.hbm [shape: bf16[2,8,256], index: 6, kind: output, shape index: {}]  }
   0x1   :  { %v30_v0 = vld [vmem:[%s630_s1] sm:$0xff]  ;;  %429 = vset.pattern.permute.xlu1 %v467_v1  ;;  %427 = vset.pattern.permute.xlu0 %v468_v2 }
   0x2   :  { %96 = vperm.xlu1 %429, %v30_v0   ;;  %62 = vperm.xlu0 %427, %v30_v0   ;;  %v530_v3 = vld [vmem:[%s629_s0] sm:$0xff] }
   0x3   :  { %11 = vsyncpa [#allocation4], 0  ;;  %s469_s25 = smov 17   ;;  %v470_v4 = vmov 0   ;;  %v536_v5 = vld [vmem:[%s629_s0 + $0x8] sm:$0xff]  ;;  %v471_v6 = vmov 2   ;;  %v31_v24 = vlaneseq }
   0x4   :  { %s472_s27 = smov 16   ;;  %v473_v7 = vmov 3   ;;  %v474_v8 = vmov 5   ;;  %s475_s28 = smov 15   ;;  %v476_v9 = vmov 6   ;;  %v478_v10 = vmov 7  }
   0x5   :  { %s477_s0 = smov 1   ;;  %v479_v11 = vmov 8   ;;  %s480_s29 = smov 127   ;;  %v211_v12 = vld [vmem:[%s631_s2] sm:$0xff]  ;;  %v571_v27 = vand.u32 127, %v31_v24  ;;  %v484_v34 = vmov 0.0  }
   0x6   :  { %67 = vrot.lane.b32.xlu1 %v530_v3, %s469_s25  ;;  %428 = vset.pattern.permute.xlu0 %v470_v4  ;;  %s481_s30 = smov 111   ;;  %s482_s9 = smov 113   ;;  %v223_v13 = vld [vmem:[%s632_s3] sm:$0xff] }
   0x7   :  { %79 = vperm.xlu0 %428, %v30_v0   ;;  %437 = vset.pattern.permute.xlu1 %v470_v4  ;;  %v225_v14 = vld [vmem:[%s634_s5] sm:$0xff]  ;;  %s483_s14 = smov 112   ;;  %v34_v29 = vand.u32 15, %v571_v27  ;;  %v33_v30 = vadd.s32 128, %v571_v27  ;;  %vm36_vm0 = vcmp.ge.s32.totalorder %v571_v27, 16  ;;  %vm71_vm2 = vcmp.lt.s32.totalorder %v571_v27, 17 }
   0x8   :  { %v224_v15 = vld [vmem:[%s633_s4] sm:$0xff]  ;;  %v396_v35 = vsel %vm36_vm0, 1.0, %v484_v34  ;;  %vm90_vm5 = vcmp.lt.s32.totalorder %v571_v27, 16  ;;  %vm107_vm6 = vcmp.lt.s32.totalorder %v571_v27, 15  ;;  %vm126_vm8 = vcmp.lt.s32.totalorder %v571_v27, 1  ;;  %s485_s4 = smov [#allocation3]  }
   0x9   :  { %vm48_vm1 = vcmp.ge.s32.totalorder %v34_v29, 1  ;;  %v35_v33 = vand.u32 15, %v33_v30  ;;  %vm54_vm3 = vcmp.le.s32.totalorder %v34_v29, 14  ;;  %vm43_vm9 = vcmp.lt.s32.totalorder %v33_v30, 240  ;;  %s385_s5 = sshll.u32 %s485_s4, 4  ;;  %s386_s5 = int_to_ptr.vmem [resolvable:$true] %s385_s5 }
   0xa   :  { %69 = vrot.lane.b32.xlu1 %v536_v5, %s469_s25  ;;  %v578_v36 = vsel %vm48_vm1, 1.0, %v484_v34  ;;  %v585_v41 = vsel %vm54_vm3, 1.0, %v484_v34  ;;  %vm143_vm10 = vcmp.lt.s32.totalorder %v571_v27, 127  ;;  %v397_v57 = vsel %vm43_vm9, 1.0, %v484_v34  ;;  %s443_s15 = scalar_lea.vmem %s386_s5, 256  ;;  %p448_p1 = scmp.lt.s32.totalorder %s386_s5, %s386_s5 }
   0xb   :  { %430 = vset.pattern.permute.xlu0 %v471_v6  ;;  %vm49_vm4 = vcmp.ge.s32.totalorder %v35_v33, 1  ;;  %v74_v39 = vmul.f32 %v578_v36, %v396_v35  ;;  %vm55_vm7 = vcmp.le.s32.totalorder %v35_v33, 14  ;;  %v110_v48 = vmul.f32 %v585_v41, %v396_v35  ;;  %p444_p0 = scmp.ne.s32.totalorder %s386_s5, %s443_s15  ;;  %p449_p2 = scmp.lt.s32.totalorder %s443_s15, %s443_s15 }
   0xc   :  { %115 = vperm.xlu0 %430, %v30_v0   ;;  %v399_v43 = vsel %vm49_vm4, 1.0, %v484_v34  ;;  %v401_v53 = vsel %vm55_vm7, 1.0, %v484_v34  ;;  %vm160_vm11 = vcmp.lt.s32.totalorder %v571_v27, 113  ;;  %vm179_vm12 = vcmp.lt.s32.totalorder %v571_v27, 112 }
   0xd   :  { %vm196_vm13 = vcmp.lt.s32.totalorder %v571_v27, 111  ;;  %p450_p3 = por %p449_p2, %p448_p1 }
   0xe   :  { %86 = vrot.lane.b32.xlu1 %v530_v3, %s472_s27 }
   0xf   :  { %p451_p4 = pnand %p450_p3, %p444_p0 }
  0x10   :  { %431 = vset.pattern.permute.xlu0 %v473_v7 }
  0x11   :  { %132 = vperm.xlu0 %431, %v30_v0  }
  0x12   :  { %88 = vrot.lane.b32.xlu1 %v536_v5, %s472_s27 }
  0x15   :  { %432 = vset.pattern.permute.xlu0 %v474_v8 }
  0x16   :  { %103 = vrot.lane.b32.xlu1 %v530_v3, %s475_s28  ;;  %149 = vperm.xlu0 %432, %v30_v0  }
  0x1a   :  { %105 = vrot.lane.b32.xlu1 %v536_v5, %s475_s28  ;;  %433 = vset.pattern.permute.xlu0 %v476_v9 }
  0x1b   :  { %168 = vperm.xlu0 %433, %v30_v0  }
  0x1e   :  { %122 = vrot.lane.b32.xlu1 %v530_v3, %s477_s0 }
  0x1f   :  { %434 = vset.pattern.permute.xlu0 %v478_v10  ;;  %v164_v10 = vmul.f32 %v399_v43, %v397_v57 }
  0x20   :  { %185 = vperm.xlu0 %434, %v30_v0  }
  0x22   :  { %124 = vrot.lane.b32.xlu1 %v536_v5, %s477_s0 }
  0x24   :  { %435 = vset.pattern.permute.xlu0 %v479_v11 }
  0x25   :  { %204 = vperm.xlu0 %435, %v30_v0  }
  0x26   :  { %139 = vrot.lane.b32.xlu1 %v530_v3, %s480_s29 }
  0x29   :  { %192 = vrot.lane.b32.xlu0 %v530_v3, %s481_s30 }
  0x2a   :  { %141 = vrot.lane.b32.xlu1 %v536_v5, %s480_s29  ;;  %436 = vset.pattern.permute.xlu0 %v470_v4 }
  0x2d   :  { %214 = vperm.xlu0 %436, %v211_v12  }
  0x2e   :  { %156 = vrot.lane.b32.xlu1 %v530_v3, %s482_s9 }
  0x31   :  { %439 = vset.pattern.permute.xlu0 %v471_v6 }
  0x32   :  { %158 = vrot.lane.b32.xlu1 %v536_v5, %s482_s9  ;;  %260 = vperm.xlu0 %439, %v223_v13  }
  0x36   :  { %175 = vrot.lane.b32.xlu1 %v530_v3, %s483_s14  ;;  %442 = vset.pattern.permute.xlu0 %v470_v4 }
  0x37   :  { %300 = vperm.xlu0 %442, %v225_v14  }
  0x3a   :  { %177 = vrot.lane.b32.xlu1 %v536_v5, %s483_s14 }
  0x3e   :  { %194 = vrot.lane.b32.xlu1 %v536_v5, %s481_s30 }
  0x42   :  { %228 = vperm.xlu1 %437, %v223_v13  }
  0x46   :  { %438 = vset.pattern.permute.xlu1 %v467_v1 }
  0x47   :  { %244 = vperm.xlu1 %438, %v223_v13  }
  0x4b   :  { %440 = vset.pattern.permute.xlu1 %v473_v7 }
  0x4c   :  { %276 = vperm.xlu1 %440, %v223_v13  }
  0x50   :  { %441 = vset.pattern.permute.xlu1 %v470_v4 }
  0x51   :  { %293 = vperm.xlu1 %441, %v224_v15  }
  0x81   :  { %v566_v16 = vpop.permute.xlu1 %96  ;;  %v63_v20 = vpop.permute.xlu0 %62 }
  0x82   :  { %v65_v55 = vmul.f32 %v63_v20, %v530_v3  ;;  %v66_v62 = vmul.f32 %v63_v20, %v536_v5 }
  0x85   :  { %v68_v17 = vpop.permute.xlu1 %67 }
  0x86   :  { %v80_v22 = vpop.permute.xlu0 %79 }
  0x89   :  { %v70_v18 = vpop.permute.xlu1 %69 }
  0x8a   :  { %v73_v40 = vsel %vm71_vm2, %v70_v18, %v68_v17  ;;  %v72_v44 = vsel %vm71_vm2, %v68_v17, %v70_v18 }
  0x8b   :  { %v568_v26 = vpop.permute.xlu0 %115  ;;  %v76_v47 = vmul.f32 %v74_v39, %v73_v40  ;;  %v77_v49 = vmul.f32 %v399_v43, %v72_v44  ;;  %v200_v39 = vmul.f32 %v401_v53, %v397_v57 }
  0x8d   :  { %v87_v19 = vpop.permute.xlu1 %86  ;;  %v82_v58 = vmul.f32 %v80_v22, %v76_v47  ;;  %v83_v63 = vmul.f32 %v80_v22, %v77_v49 }
  0x8f   :  { %v84_v11 = vadd.f32 %v82_v58, %v65_v55  ;;  %v85_v14 = vadd.f32 %v83_v63, %v66_v62 }
  0x90   :  { %v575_v31 = vpop.permute.xlu0 %132 }
  0x91   :  { %v89_v21 = vpop.permute.xlu1 %88 }
  0x92   :  { %v92_v45 = vsel %vm90_vm5, %v89_v21, %v87_v19  ;;  %v91_v59 = vsel %vm90_vm5, %v87_v19, %v89_v21 }
  0x93   :  { %v93_v52 = vmul.f32 %v396_v35, %v92_v45  ;;  %v100_v8 = vmul.f32 %v566_v16, %v91_v59 }
  0x95   :  { %v104_v23 = vpop.permute.xlu1 %103  ;;  %v580_v37 = vpop.permute.xlu0 %149  ;;  %v99_v3 = vmul.f32 %v566_v16, %v93_v52  ;;  %v102_v16 = vadd.f32 %v100_v8, %v85_v14 }
  0x97   :  { %v101_v20 = vadd.f32 %v99_v3, %v84_v11 }
  0x99   :  { %v106_v25 = vpop.permute.xlu1 %105 }
  0x9a   :  { %v169_v46 = vpop.permute.xlu0 %168  ;;  %v109_v50 = vsel %vm107_vm6, %v106_v25, %v104_v23  ;;  %v108_v54 = vsel %vm107_vm6, %v104_v23, %v106_v25 }
  0x9b   :  { %v112_v60 = vmul.f32 %v110_v48, %v109_v50  ;;  %v113_v0 = vmul.f32 %v401_v53, %v108_v54 }
  0x9d   :  { %v123_v28 = vpop.permute.xlu1 %122  ;;  %v118_v12 = vmul.f32 %v568_v26, %v112_v60  ;;  %v119_v15 = vmul.f32 %v568_v26, %v113_v0 }
  0x9f   :  { %v186_v1 = vpop.permute.xlu0 %185  ;;  %v120_v29 = vadd.f32 %v118_v12, %v101_v20  ;;  %v121_v30 = vadd.f32 %v119_v15, %v102_v16 }
  0xa1   :  { %v125_v32 = vpop.permute.xlu1 %124 }
  0xa2   :  { %v128_v56 = vsel %vm126_vm8, %v125_v32, %v123_v28  ;;  %v127_v61 = vsel %vm126_vm8, %v123_v28, %v125_v32 }
  0xa3   :  { %v129_v4 = vmul.f32 %v578_v36, %v128_v56  ;;  %v130_v9 = vmul.f32 %v399_v43, %v127_v61 }
  0xa4   :  { %v205_v23 = vpop.permute.xlu0 %204 }
  0xa5   :  { %v140_v38 = vpop.permute.xlu1 %139  ;;  %v135_v21 = vmul.f32 %v575_v31, %v129_v4  ;;  %v136_v22 = vmul.f32 %v575_v31, %v130_v9 }
  0xa7   :  { %v137_v34 = vadd.f32 %v135_v21, %v120_v29  ;;  %v138_v40 = vadd.f32 %v136_v22, %v121_v30 }
  0xa8   :  { %v193_v45 = vpop.permute.xlu0 %192 }
  0xa9   :  { %v142_v42 = vpop.permute.xlu1 %141 }
  0xaa   :  { %v144_v6 = vsel %vm143_vm10, %v140_v38, %v142_v42  ;;  %v145_v7 = vsel %vm143_vm10, %v142_v42, %v140_v38 }
  0xab   :  { %v146_v17 = vmul.f32 %v585_v41, %v144_v6  ;;  %v147_v18 = vmul.f32 %v401_v53, %v145_v7 }
  0xac   :  { %v215_v60 = vpop.permute.xlu0 %214 }
  0xad   :  { %v157_v51 = vpop.permute.xlu1 %156  ;;  %v152_v26 = vmul.f32 %v580_v37, %v146_v17  ;;  %v153_v32 = vmul.f32 %v580_v37, %v147_v18 }
  0xaf   :  { %v154_v44 = vadd.f32 %v152_v26, %v137_v34 }
  0xb1   :  { %v159_v2 = vpop.permute.xlu1 %158 }
  0xb2   :  { %v161_v5 = vsel %vm160_vm11, %v157_v51, %v159_v2  ;;  %v162_v13 = vsel %vm160_vm11, %v159_v2, %v157_v51  ;;  %v232_v51 = vshrl.u32 %v31_v24, 7 }
  0xb3   :  { %v165_v25 = vmul.f32 %v578_v36, %v161_v5  ;;  %v166_v28 = vmul.f32 %v164_v10, %v162_v13  ;;  %v155_v36 = vadd.f32 %v153_v32, %v138_v40 }
  0xb4   :  { %v233_v61 = vsub.s32 0, %v232_v51  ;;  %v249_v62 = vsub.s32 1, %v232_v51  ;;  %v330_v27 = vsub.s32 5, %v232_v51  ;;  %v265_v4 = vsub.s32 2, %v232_v51 }
  0xb5   :  { %v176_v19 = vpop.permute.xlu1 %175  ;;  %v171_v42 = vmul.f32 %v169_v46, %v165_v25  ;;  %v172_v31 = vmul.f32 %v169_v46, %v166_v28  ;;  %v342_v6 = vsub.s32 6, %v232_v51  ;;  %v281_v7 = vsub.s32 3, %v232_v51 }
  0xb7   :  { %v174_v52 = vadd.f32 %v172_v31, %v155_v36  ;;  %v173_v53 = vadd.f32 %v171_v42, %v154_v44 }
  0xb9   :  { %v178_v33 = vpop.permute.xlu1 %177 }
  0xba   :  { %v180_v35 = vsel %vm179_vm12, %v176_v19, %v178_v33  ;;  %v181_v38 = vsel %vm179_vm12, %v178_v33, %v176_v19 }
  0xbb   :  { %v183_v43 = vmul.f32 %v397_v57, %v181_v38  ;;  %v188_v47 = vmul.f32 %v186_v1, %v180_v35 }
  0xbd   :  { %v189_v48 = vmul.f32 %v186_v1, %v183_v43  ;;  %v195_v49 = vpop.permute.xlu1 %194  ;;  %v190_v55 = vadd.f32 %v188_v47, %v173_v53  ;;  %v318_v1 = vsub.s32 4, %v232_v51 }
  0xbe   :  { %v197_v37 = vsel %vm196_vm13, %v193_v45, %v195_v49  ;;  %v198_v50 = vsel %vm196_vm13, %v195_v49, %v193_v45 }
  0xbf   :  { %v201_v54 = vmul.f32 %v585_v41, %v197_v37  ;;  %v202_v46 = vmul.f32 %v200_v39, %v198_v50  ;;  %v191_v59 = vadd.f32 %v189_v48, %v174_v52  ;;  %v354_v41 = vsub.s32 7, %v232_v51 }
  0xc1   :  { %v207_v56 = vmul.f32 %v205_v23, %v201_v54  ;;  %v208_v57 = vmul.f32 %v205_v23, %v202_v46  ;;  %v229_v58 = vpop.permute.xlu1 %228  ;;  %v261_v23 = vpop.permute.xlu0 %260 }
  0xc3   :  { %v209_v63 = vadd.f32 %v207_v56, %v190_v55  ;;  %v210_v0 = vadd.f32 %v208_v57, %v191_v59 }
  0xc5   :  { %v217_v2 = vadd.f32 %v215_v60, %v209_v63  ;;  %v218_v3 = vadd.f32 %v215_v60, %v210_v0  ;;  %v301_v57 = vpop.permute.xlu0 %300 }
  0xc6   :  { %v245_v24 = vpop.permute.xlu1 %244 }
  0xc7   :  { %v238_v8 = vrot.slane %v218_v3, %v233_v61  ;;  %v254_v9 = vrot.slane %v218_v3, %v249_v62  ;;  %v323_v10 = vrot.slane %v218_v3, %v318_v1  ;;  %v335_v11 = vrot.slane %v218_v3, %v330_v27 }
  0xc8   :  { %v234_v12 = vrot.slane %v217_v2, %v233_v61  ;;  %v250_v5 = vrot.slane %v217_v2, %v249_v62  ;;  %v319_v13 = vrot.slane %v217_v2, %v318_v1  ;;  %v331_v14 = vrot.slane %v217_v2, %v330_v27 }
  0xc9   :  { %v240_v15 = vmul.f32 %v238_v8, %v229_v58  ;;  %v325_v17 = vmul.f32 %v323_v10, %v229_v58  ;;  %v256_v18 = vmul.f32 %v254_v9, %v245_v24  ;;  %v337_v19 = vmul.f32 %v335_v11, %v245_v24 }
  0xca   :  { %v239_v20 = vmul.f32 %v234_v12, %v229_v58  ;;  %v255_v21 = vmul.f32 %v250_v5, %v245_v24  ;;  %v324_v16 = vmul.f32 %v319_v13, %v229_v58  ;;  %v336_v22 = vmul.f32 %v331_v14, %v245_v24 }
  0xcb   :  { %v258_v25 = vadd.f32 %v256_v18, %v240_v15  ;;  %v339_v28 = vadd.f32 %v337_v19, %v325_v17  ;;  %v266_v29 = vrot.slane %v217_v2, %v265_v4  ;;  %v270_v30 = vrot.slane %v218_v3, %v265_v4  ;;  %v277_v26 = vpop.permute.xlu1 %276 }
  0xcc   :  { %v257_v32 = vadd.f32 %v255_v21, %v239_v20  ;;  %v338_v33 = vadd.f32 %v336_v22, %v324_v16  ;;  %v343_v34 = vrot.slane %v217_v2, %v342_v6  ;;  %v347_v35 = vrot.slane %v218_v3, %v342_v6 }
  0xcd   :  { %v271_v38 = vmul.f32 %v266_v29, %v261_v23  ;;  %v272_v39 = vmul.f32 %v270_v30, %v261_v23  ;;  %v286_v40 = vrot.slane %v218_v3, %v281_v7  ;;  %v359_v42 = vrot.slane %v218_v3, %v354_v41 }
  0xce   :  { %v348_v31 = vmul.f32 %v343_v34, %v261_v23  ;;  %v349_v43 = vmul.f32 %v347_v35, %v261_v23  ;;  %v282_v44 = vrot.slane %v217_v2, %v281_v7  ;;  %v355_v36 = vrot.slane %v217_v2, %v354_v41 }
  0xcf   :  { %v288_v45 = vmul.f32 %v286_v40, %v277_v26  ;;  %v361_v47 = vmul.f32 %v359_v42, %v277_v26  ;;  %v274_v48 = vadd.f32 %v272_v39, %v258_v25  ;;  %v273_v49 = vadd.f32 %v271_v38, %v257_v32 }
  0xd0   :  { %v287_v37 = vmul.f32 %v282_v44, %v277_v26  ;;  %v360_v50 = vmul.f32 %v355_v36, %v277_v26  ;;  %v351_v51 = vadd.f32 %v349_v43, %v339_v28  ;;  %v294_v52 = vpop.permute.xlu1 %293  ;;  %v350_v53 = vadd.f32 %v348_v31, %v338_v33 }
  0xd1   :  { %v290_v54 = vadd.f32 %v288_v45, %v274_v48 }
  0xd2   :  { %v363_v46 = vadd.f32 %v361_v47, %v351_v51  ;;  %v289_v55 = vadd.f32 %v287_v37, %v273_v49  ;;  %v362_v56 = vadd.f32 %v360_v50, %v350_v53 }
  0xd3   :  { %v297_v58 = vmul.f32 %v294_v52, %v290_v54 }
  0xd4   :  { %v296_v59 = vmul.f32 %v294_v52, %v289_v55  ;;  %v364_v60 = vmul.f32 %v362_v56, %v294_v52  ;;  %v365_v61 = vmul.f32 %v363_v46, %v294_v52 }
  0xd5   :  { %v304_v62 = vadd.f32 %v301_v57, %v297_v58 }
  0xd6   :  { %v303_v63 = vadd.f32 %v301_v57, %v296_v59  ;;  %v366_v0 = vadd.f32 %v364_v60, %v301_v57  ;;  %v367_v1 = vadd.f32 %v365_v61, %v301_v57 }
  0xd7   :  { %v306_v27 = vmax.f32 %v304_v62, 0.0 }
  0xd8   :  { %v305_v2 = vmax.f32 %v303_v63, 0.0  ;;  %v368_v3 = vmax.f32 %v366_v0, 0.0  ;;  %v369_v24 = vmax.f32 %v367_v1, 0.0 }
  0xda   :  { %v404_v4 = vpack.c.bf16 %v306_v27, %v305_v2  ;;  %v405_v6 = vpack.c.bf16 %v369_v24, %v368_v3 }
  0xdc   :  { %315 = vst [vmem:[#allocation3] sm:$0xff] %v404_v4  ;;  %379 = vst [vmem:[#allocation3 + $0x8] sm:$0xff] %v405_v6 }
  0xdd   :  { %454 = shalt.err (!%p451_p4)
}
  0xde   :  { %s455_s18 = scalar_lea.hbm %s635_s6, 256 }
  0xdf   :  { %p456_p5 = scmp.ne.s32.totalorder %s635_s6, %s455_s18  ;;  %p459_p6 = scmp.lt.u32.totalorder %s455_s18, %s635_s6 }
  0xe1   :  { %p461_p7 = pnand %p459_p6, %p456_p5 }
  0xe3   :  { %464 = shalt.err (!%p461_p7)
}
  0xe4   :  { %s486_s23 = smov 128   ;;  %s487_s24 = smov 8  }
  0xe5   :  { %391 = dma.vmem_to_hbm [thread:$0]  %s386_s5, 256, %s635_s6, [#allocation4], %s486_s23, %s486_s23, %s487_s24  }
  0xe6   :  { %465 = dma.done.wait [#allocation4], 256  }
  0xe7   :  { %466 = vsyncadd [#allocation4], 4294967040 }
  0xe8   :  { %395 = vsyncpa [#allocation4], 1 }

</bundles_post_ra>
